<compile_context>
chip_gen: v5e
topology: v5e:2x2
jax: 0.10.0
libtpu: 0.0.40
codegen_flags: <defaults>
</compile_context>

<pallas_src>
import math

import jax
import jax.numpy as jnp
from jax.experimental import pallas as pl
from jax.experimental.pallas import tpu as pltpu

D_MODEL = 28
MAX_LEN = 2000
LANE = 128  # TPU lane width (fast vreg axis)


def _round_up(n: int, m: int) -> int:
    return ((n + m - 1) // m) * m


def make_pe_table(d_model: int = D_MODEL, max_len: int = MAX_LEN,
                  dtype=jnp.float32) -> jnp.ndarray:
    """Deterministic sin/cos positional-encoding buffer, shape [max_len, d_model]."""
    position = jnp.arange(max_len, dtype=jnp.float32)[:, None]            # [max_len, 1]
    div_term = jnp.exp(
        jnp.arange(0, d_model, 2, dtype=jnp.float32) * (-math.log(10000.0) / d_model)
    )                                                                      # [d_model//2]
    ang = position * div_term                                              # [max_len, d_model//2]
    # interleave: pe[:, 0::2] = sin, pe[:, 1::2] = cos   (even d_model)
    pe = jnp.stack([jnp.sin(ang), jnp.cos(ang)], axis=-1).reshape(max_len, d_model)
    return pe.astype(dtype)


def _pe_add_kernel(x_ref, pe_ref, o_ref):
    # Lane-dense [tR, 128] tiles; pure VPU elementwise add.
    o_ref[...] = x_ref[...] + pe_ref[...]


def positional_encoding_forward(x: jnp.ndarray, pe: jnp.ndarray, *,
                                block_rows: int = 512,
                                force_pallas: bool = False) -> jnp.ndarray:
    """x: [seq_len, batch, d_model]; pe: [max_len, d_model] (or [max_len, 1, d_model]).

    Returns x + pe[:seq_len] (eval-mode dropout == identity).
    """
    S, B, D = x.shape
    if pe.ndim == 3:  # accept the PyTorch-style [max_len, 1, d_model] buffer too
        pe = pe.reshape(pe.shape[0], pe.shape[-1])
    pe_s = pe[:S].astype(x.dtype)                                          # [S, D]

    N = S * B * D
    if (not force_pallas) and N < (1 << 14):
        # Tiny workloads: kernel dispatch dominates; let XLA fuse the add.
        return x + pe_s[:, None, :]

    # Pre-broadcast pe over batch, then flatten both operands into a
    # lane-dense, zero-padded 2-D slab whose last dim is exactly 128 lanes.
    pe_b = jnp.broadcast_to(pe_s[:, None, :], (S, B, D))                   # [S, B, D]

    rows = -(-N // LANE)                                                   # ceil(N / 128)
    if rows >= block_rows:
        tR = block_rows                                                    # multiple of 8
    else:
        tR = _round_up(max(rows, 1), 8)                                    # small input: 1 block
    rows_p = _round_up(rows, tR)
    pad = rows_p * LANE - N

    x_flat = jnp.pad(x.reshape(-1), (0, pad)).reshape(rows_p, LANE)
    pe_flat = jnp.pad(pe_b.reshape(-1), (0, pad)).reshape(rows_p, LANE)

    grid = (rows_p // tR,)
    out_flat = pl.pallas_call(
        _pe_add_kernel,
        out_shape=jax.ShapeDtypeStruct((rows_p, LANE), x.dtype),
        grid=grid,
        in_specs=[
            pl.BlockSpec((tR, LANE), lambda i: (i, 0)),
            pl.BlockSpec((tR, LANE), lambda i: (i, 0)),
        ],
        out_specs=pl.BlockSpec((tR, LANE), lambda i: (i, 0)),
        compiler_params=pltpu.CompilerParams(
            dimension_semantics=("parallel",),
        ),
    )(x_flat, pe_flat)

    return out_flat.reshape(-1)[:N].reshape(S, B, D)


if __name__ == "__main__":
    key = jax.random.PRNGKey(0)
    pe = make_pe_table(D_MODEL, MAX_LEN)

    # Small, deterministic example matching the module: seq_len=8, batch=2, d_model=28.
    seq_len, batch = 8, 2
    x = jax.random.normal(key, (seq_len, batch, D_MODEL), dtype=jnp.float32)

    out = positional_encoding_forward(x, pe, force_pallas=True)
    out = jax.block_until_ready(out)

    ref = x + pe[:seq_len][:, None, :]
    assert out.shape == (seq_len, batch, D_MODEL)
    assert jnp.allclose(out, ref, atol=1e-6, rtol=1e-6)

    # Second (still small) case that exercises the multi-block tiled path + padding.
    key2 = jax.random.PRNGKey(0)
    S2, B2 = 256, 4
    x2 = jax.random.normal(key2, (S2, B2, D_MODEL), dtype=jnp.float32)
    out2 = positional_encoding_forward(x2, pe, block_rows=64, force_pallas=True)
    out2 = jax.block_until_ready(out2)
    ref2 = x2 + pe[:S2][:, None, :]
    assert out2.shape == (S2, B2, D_MODEL)
    assert jnp.allclose(out2, ref2, atol=1e-6, rtol=1e-6)

    print("KERNEL_OK")
</pallas_src>

<mosaic_0001>
module attributes {stable_mosaic.version = 11 : i64} {
  func.func @_pe_add_kernel(%arg0: i32, %arg1: memref<8x128xf32, #tpu.memory_space<vmem>>, %arg2: memref<8x128xf32, #tpu.memory_space<vmem>>, %arg3: memref<8x128xf32, #tpu.memory_space<vmem>>) attributes {dimension_semantics = [#tpu.dimension_semantics<parallel>], iteration_bounds = array<i64: 1>, scalar_prefetch = 0 : i64, scratch_operands = 0 : i64, tpu.core_type = #tpu.core_type<tc>, window_params = [{transform_indices = @transform_0, window_bounds = array<i64: 8, 128>}, {transform_indices = @transform_1, window_bounds = array<i64: 8, 128>}, {transform_indices = @transform_2, window_bounds = array<i64: 8, 128>}]} {
    %c0 = arith.constant 0 : index
    %c0_0 = arith.constant 0 : index
    %0 = vector.load %arg1[%c0, %c0_0] : memref<8x128xf32, #tpu.memory_space<vmem>>, vector<8x128xf32>
    %c0_1 = arith.constant 0 : index
    %c0_2 = arith.constant 0 : index
    %1 = vector.load %arg2[%c0_1, %c0_2] : memref<8x128xf32, #tpu.memory_space<vmem>>, vector<8x128xf32>
    %2 = arith.addf %0, %1 : vector<8x128xf32>
    %c0_3 = arith.constant 0 : index
    %c0_4 = arith.constant 0 : index
    %3 = vector.load %arg3[%c0_3, %c0_4] : memref<8x128xf32, #tpu.memory_space<vmem>>, vector<8x128xf32>
    tpu.vector_store %arg3[%c0_3, %c0_4], %2 {strides = array<i32>} : memref<8x128xf32, #tpu.memory_space<vmem>>, vector<8x128xf32>,
    return
  }
  func.func @transform_0(%arg0: i32) -> (i32, i32) {
    %c0_i32 = arith.constant 0 : i32
    %c0_i32_0 = arith.constant 0 : i32
    return %arg0, %c0_i32 : i32, i32
  }
  func.func @transform_1(%arg0: i32) -> (i32, i32) {
    %c0_i32 = arith.constant 0 : i32
    %c0_i32_0 = arith.constant 0 : i32
    return %arg0, %c0_i32 : i32, i32
  }
  func.func @transform_2(%arg0: i32) -> (i32, i32) {
    %c0_i32 = arith.constant 0 : i32
    %c0_i32_0 = arith.constant 0 : i32
    return %arg0, %c0_i32 : i32, i32
  }
}

</mosaic_0001>

<bundles_post_ra>
// kernel: tpu_custom_call.1
= control target key start
LH: loop header
LB: loop body
LE: loop exit
PB: predicated region body
PF: predicated region fallthrough
CT: control target
= control target key end

     0   :  { %7 = vsyncpa [#allocation3], 0  ;;  %s170_s0 = inlined_call_operand.hbm [shape: f32[8,128], index: 0, kind: input, shape index: {}]   ;;  %s171_s1 = inlined_call_operand.hbm [shape: f32[8,128], index: 1, kind: input, shape index: {}]   ;;  %s172_s2 = inlined_call_operand.hbm [shape: f32[8,128], index: 2, kind: output, shape index: {}]  }
   0x1   :  { %8 = vsyncpa [#allocation6], 0 }
   0x2   :  { %9 = vsyncpa [#allocation4], 0  ;;  %s15_s11 = sshll.u32 %s170_s0, 4  ;;  %s143_s12 = smov [#allocation2]   ;;  %s16_s11 = int_to_ptr.hbm [resolvable:$true] %s15_s11 }
   0x3   :  { %s17_s13 = sshll.u32 %s143_s12, 4  ;;  %s26_s16 = sshll.u32 %s171_s1, 4  ;;  %s18_s13 = int_to_ptr.vmem [resolvable:$true] %s17_s13  ;;  %s27_s16 = int_to_ptr.hbm [resolvable:$true] %s26_s16 }
   0x4   :  { %20 = dma.hbm_to_vmem [thread:$0]  %s16_s11, 128, %s18_s13, [#allocation3]  }
   0x5   :  { %s144_s17 = smov [#allocation5]  }
   0x6   :  { %s28_s18 = sshll.u32 %s144_s17, 4  ;;  %s29_s18 = int_to_ptr.vmem [resolvable:$true] %s28_s18 }
   0x7   :  { %31 = dma.hbm_to_vmem [thread:$0]  %s27_s16, 128, %s29_s18, [#allocation6]  }
   0x8   :  { %137 = dma.done.wait [#allocation3], 128  }
   0x9   :  { %138 = vsyncadd [#allocation3], 4294967168 }
   0xa   :  { %139 = dma.done.wait [#allocation6], 128  }
   0xb   :  { %140 = vsyncadd [#allocation6], 4294967168  ;;  %s145_s19 = smov [#allocation7]   ;;  %s51_s22 = sshll.u32 %s172_s2, 4  ;;  %v40_v0 = vld [vmem:[#allocation2] sm:$0xff]  ;;  %v41_v1 = vld [vmem:[#allocation5] sm:$0xff]  ;;  %s52_s22 = int_to_ptr.hbm [resolvable:$true] %s51_s22 }
   0xc   :  { %s49_s0 = sshll.u32 %s145_s19, 4  ;;  %v42_v2 = vadd.f32 %v41_v1, %v40_v0  ;;  %s50_s0 = int_to_ptr.vmem [resolvable:$true] %s49_s0 }
   0xe   :  { %43 = vst [vmem:[#allocation7] sm:$0xff] %v42_v2 }
   0xf   :  { %54 = dma.vmem_to_hbm [thread:$0]  %s50_s0, 128, %s52_s22, [#allocation4]  }
  0x10   :  { %141 = dma.done.wait [#allocation4], 128  }
  0x11   :  { %142 = vsyncadd [#allocation4], 4294967168 }
  0x12   :  { %59 = vsyncpa [#allocation3], 1 }
  0x13   :  { %60 = vsyncpa [#allocation6], 1 }
  0x14   :  { %61 = vsyncpa [#allocation4], 1 }

</bundles_post_ra>
